<compile_context>
chip_gen: v7x
topology: tpu7x:2x2x1
jax: 0.10.0
libtpu: 0.0.40
codegen_flags: <defaults>
</compile_context>

<pallas_src>
import jax
import jax.numpy as jnp
from jax.experimental import pallas as pl
from jax.experimental.pallas import tpu as pltpu

H0 = 2
H1 = 20


def critic_kernel(xv_ref, extra_ref, w1_ref, b1_ref, w2_ref, b2_ref, w3m_ref,
                  out_ref):
    """One batch block of the critic forward pass.

    xv_ref  : (bB, K1)  bf16   cropped input, row-major (ci, tau, a)
    extra_ref: (1, bB)  f32    precomputed side @ w3_side + b3 (lane-dense row)
    w1_ref  : (K1, N1)  bf16   block-diag Toeplitz conv1 weights (resident)
    b1_ref  : (1, N1)   f32
    w2_ref  : (N1, N2)  bf16   block-diag conv2 weights (resident)
    b2_ref  : (1, N2)   f32
    w3m_ref : (1, N2)   f32    head weights for the phi1 part (row form)
    out_ref : (1, bB)   f32    lane-dense output row
    """
    # conv1 as a dense matmul: bf16 operands, f32 accumulation, f32 bias+relu.
    z1 = jnp.dot(xv_ref[...], w1_ref[...], preferred_element_type=jnp.float32)
    z1 = jnp.maximum(z1 + b1_ref[...], 0.0)
    # conv2 likewise; cast the activation back to bf16 only as the dot input.
    z2 = jnp.dot(z1.astype(jnp.bfloat16), w2_ref[...],
                 preferred_element_type=jnp.float32)
    z2 = jnp.maximum(z2 + b2_ref[...], 0.0)
    # Linear head on VPU + lane reduction (no N=1 MXU pass), then lane-dense
    # epilogue add with the precomputed side contribution.
    head = jnp.sum(z2 * w3m_ref[...], axis=-1, keepdims=True)      # (bB, 1)
    out_row = head.reshape(1, -1) + extra_ref[...]                  # (1, bB)
    out_ref[...] = out_row.astype(out_ref.dtype)


def _round_up(x, m):
    return ((x + m - 1) // m) * m


def _pick_block_b(B, K1):
    """Batch-block size: big enough to amortize the ~0.35us/step pipeline
    overhead, small enough that the double-buffered bf16 xv stream stays well
    under every generation's scoped VMEM default (v5e 16 MiB, v7x 32 MiB)."""
    vmem_budget = 8 * 1024 * 1024                    # for 2 * block_b * K1 * 2B
    cap = max(128, ((vmem_budget // (4 * K1)) // 128) * 128)
    if B <= 16:
        return _round_up(max(B, 1), 8)               # single tiny block
    if B <= 2048:
        # >= 2 grid steps (multiples of 128 for lane-dense output blocks) so
        # v7x's two TensorCores both get work.
        return min(cap, max(128, _round_up(pl.cdiv(B, 2), 128)))
    return min(cap, 1024)                            # large-batch steady state


def _build_structured_weights(params, F, T, A):
    """Fold the per-asset (3,1)/(T_out,1) convs into dense matmul weights."""
    w1, b1, w2, b2, w3, b3 = params
    K1 = w1.shape[2]                       # 3
    T_in = T - 1
    T_out = T_in - K1 + 1                  # == stride_time
    eye_a = jnp.eye(A, dtype=jnp.float32)

    # Toeplitz selector: S1[tau, kt, t] = 1 iff tau == t + kt.
    tau = jnp.arange(T_in)[:, None, None]
    kt = jnp.arange(K1)[None, :, None]
    t = jnp.arange(T_out)[None, None, :]
    s1 = (tau == t + kt).astype(jnp.float32)                      # (T_in, K1, T_out)

    w1s = w1[:, :, :, 0].astype(jnp.float32)                      # (H0, F, K1)
    # W1big[(ci,tau,a), (co,t,a')] = W1[co,ci,tau-t] if 0<=tau-t<K1 and a==a'
    w1big = jnp.einsum('ock,ukt,ab->cuaotb', w1s, s1, eye_a)
    w1big = w1big.reshape(F * T_in * A, H0 * T_out * A)

    w2s = w2[:, :, :, 0].astype(jnp.float32)                      # (H1, H0, T_out)
    # W2big[(ci,t,a), (co,a')] = W2[co,ci,t] if a==a'
    w2big = jnp.einsum('oct,ab->ctaob', w2s, eye_a)
    w2big = w2big.reshape(H0 * T_out * A, H1 * A)

    b1v = jnp.broadcast_to(b1.astype(jnp.float32)[:, None, None],
                           (H0, T_out, A)).reshape(1, H0 * T_out * A)
    b2v = jnp.broadcast_to(b2.astype(jnp.float32)[:, None],
                           (H1, A)).reshape(1, H1 * A)

    # PyTorch flatten order of h.view(B,-1) is c*A + a; phi1 columns are
    # co*A + a, so the first H1*A head weights line up directly; the tail is
    # the [w0 | action] side block (handled in the wrapper).
    w3f = w3.reshape(-1).astype(jnp.float32)                      # ((H1+2)*A,)
    w3_main = w3f[:H1 * A].reshape(1, H1 * A)                     # row for VPU head
    w3_side = w3f[H1 * A:].reshape(2 * A, 1)
    b3v = b3.reshape(1, 1).astype(jnp.float32)
    return (w1big.astype(jnp.bfloat16), b1v,
            w2big.astype(jnp.bfloat16), b2v,
            w3_main, w3_side, b3v)


def critic_forward(x, action, params):
    """Wrapper: layout plumbing + weight folding in XLA, compute in Pallas."""
    B, F, T, A = x.shape
    T_in = T - 1
    T_out = T_in - 2

    (w1big, b1v, w2big, b2v, w3_main, w3_side, b3v) = _build_structured_weights(
        params, F, T, A)

    K1 = F * T_in * A
    N1 = H0 * T_out * A
    N2 = H1 * A

    # Crop time / flatten / cast in the wrapper (free layout work); kernel sees
    # contiguous, tile-friendly 2-D operands only.
    xv = x[:, :, 1:, :].reshape(B, K1).astype(jnp.bfloat16)
    w0 = x[:, 0, 0, :].astype(jnp.float32)                        # (B, A)
    act = action[:, :A].astype(jnp.float32)                       # action[:, :-1]
    side = jnp.concatenate([w0, act], axis=1)                     # (B, 2*A)
    # Precompute the side head contribution + bias as a lane-dense (1, B) row.
    extra = (side @ w3_side + b3v).reshape(1, B)                  # (1, B)

    # Batch blocking: pad B to a multiple of the block so the grid always has
    # a pipelined, megacore-shardable structure (never one mega-block).
    block_b = _pick_block_b(B, K1)
    B_pad = _round_up(B, block_b)
    if B_pad != B:
        xv = jnp.pad(xv, ((0, B_pad - B), (0, 0)))
        extra = jnp.pad(extra, ((0, 0), (0, B_pad - B)))
    grid = (B_pad // block_b,)

    out_row = pl.pallas_call(
        critic_kernel,
        out_shape=jax.ShapeDtypeStruct((1, B_pad), jnp.float32),
        grid_spec=pltpu.PrefetchScalarGridSpec(
            num_scalar_prefetch=0,
            grid=grid,
            in_specs=[
                pl.BlockSpec((block_b, K1), lambda i: (i, 0)),   # xv (pipelined)
                pl.BlockSpec((1, block_b), lambda i: (0, i)),    # side+bias row
                pl.BlockSpec((K1, N1), lambda i: (0, 0)),        # W1big (resident)
                pl.BlockSpec((1, N1), lambda i: (0, 0)),         # b1
                pl.BlockSpec((N1, N2), lambda i: (0, 0)),        # W2big (resident)
                pl.BlockSpec((1, N2), lambda i: (0, 0)),         # b2
                pl.BlockSpec((1, N2), lambda i: (0, 0)),         # w3 (phi1 row)
            ],
            out_specs=pl.BlockSpec((1, block_b), lambda i: (0, i)),
        ),
        compiler_params=pltpu.CompilerParams(
            dimension_semantics=("parallel",)),
    )(xv, extra, w1big, b1v, w2big, b2v, w3_main)

    return out_row[0, :B].reshape(B, 1)


def critic_reference(x, action, params):
    """Pure-JAX reference (XLA conv, f32) used as a correctness check."""
    w1, b1, w2, b2, w3, b3 = params
    act = action[:, None, None, :-1]
    w0 = x[:, :1, :1, :]
    xc = x[:, :, 1:, :]
    dn = ('NCHW', 'OIHW', 'NCHW')
    phi0 = jax.nn.relu(jax.lax.conv_general_dilated(
        xc, w1, window_strides=(1, 1), padding='VALID',
        dimension_numbers=dn) + b1[None, :, None, None])
    phi1 = jax.nn.relu(jax.lax.conv_general_dilated(
        phi0, w2, window_strides=(w2.shape[2], 1), padding='VALID',
        dimension_numbers=dn) + b2[None, :, None, None])
    h = jnp.concatenate([phi1, w0, act], axis=1)
    hf = h.reshape(x.shape[0], -1)
    return hf @ w3.T + b3[None, :]


def init_params(key, features, time, assets):
    """Deterministic synthetic parameters with the module's shapes."""
    stride_time = time - 1 - 2
    ks = jax.random.split(key, 6)
    w1 = jax.random.uniform(ks[0], (H0, features, 3, 1), jnp.float32, -0.3, 0.3)
    b1 = jax.random.uniform(ks[1], (H0,), jnp.float32, -0.1, 0.1)
    w2 = jax.random.uniform(ks[2], (H1, H0, stride_time, 1), jnp.float32, -0.3, 0.3)
    b2 = jax.random.uniform(ks[3], (H1,), jnp.float32, -0.1, 0.1)
    w3 = jax.random.uniform(ks[4], (1, (H1 + 2) * assets), jnp.float32, -0.1, 0.1)
    b3 = jax.random.uniform(ks[5], (1,), jnp.float32, -0.1, 0.1)
    return (w1, b1, w2, b2, w3, b3)


if __name__ == "__main__":
    # Small shapes consistent with the module:
    #   state_dim = (features, time, assets) = (3, 10, 8), action_dim = assets + 1 = 9
    B, F, T, A = 2, 3, 10, 8
    action_dim = A + 1

    key = jax.random.PRNGKey(0)
    kx, ka, kp = jax.random.split(key, 3)
    x = jax.random.normal(kx, (B, F, T, A), jnp.float32)
    action = jax.random.uniform(ka, (B, action_dim), jnp.float32)
    params = init_params(kp, F, T, A)

    out = critic_forward(x, action, params)
    out = jax.block_until_ready(out)

    ref = jax.block_until_ready(critic_reference(x, action, params))
    assert out.shape == (B, 1)
    # bf16 MXU operands (f32 accumulation) -> loosened tolerance vs f32 reference.
    assert jnp.allclose(out, ref, rtol=5e-2, atol=5e-2), (out, ref)

    print("KERNEL_OK")
</pallas_src>

<mosaic_0001>
module attributes {stable_mosaic.version = 11 : i64} {
  func.func @critic_kernel(%arg0: i32, %arg1: memref<8x216xbf16, #tpu.memory_space<vmem>>, %arg2: memref<1x8xf32, #tpu.memory_space<vmem>>, %arg3: memref<216x112xbf16, #tpu.memory_space<vmem>>, %arg4: memref<1x112xf32, #tpu.memory_space<vmem>>, %arg5: memref<112x160xbf16, #tpu.memory_space<vmem>>, %arg6: memref<1x160xf32, #tpu.memory_space<vmem>>, %arg7: memref<1x160xf32, #tpu.memory_space<vmem>>, %arg8: memref<1x8xf32, #tpu.memory_space<vmem>>) attributes {dimension_semantics = [#tpu.dimension_semantics<parallel>], iteration_bounds = array<i64: 1>, scalar_prefetch = 0 : i64, scratch_operands = 0 : i64, tpu.core_type = #tpu.core_type<tc>, window_params = [{transform_indices = @transform_0, window_bounds = array<i64: 8, 216>}, {transform_indices = @transform_1, window_bounds = array<i64: 1, 8>}, {pipeline_mode = #tpu.pipeline_mode<synchronous>, transform_indices = @transform_2, window_bounds = array<i64: 216, 112>}, {pipeline_mode = #tpu.pipeline_mode<synchronous>, transform_indices = @transform_3, window_bounds = array<i64: 1, 112>}, {pipeline_mode = #tpu.pipeline_mode<synchronous>, transform_indices = @transform_4, window_bounds = array<i64: 112, 160>}, {pipeline_mode = #tpu.pipeline_mode<synchronous>, transform_indices = @transform_5, window_bounds = array<i64: 1, 160>}, {pipeline_mode = #tpu.pipeline_mode<synchronous>, transform_indices = @transform_6, window_bounds = array<i64: 1, 160>}, {transform_indices = @transform_7, window_bounds = array<i64: 1, 8>}]} {
    %c0 = arith.constant 0 : index
    %c0_0 = arith.constant 0 : index
    %0 = vector.load %arg1[%c0, %c0_0] : memref<8x216xbf16, #tpu.memory_space<vmem>>, vector<8x216xbf16>
    %c0_1 = arith.constant 0 : index
    %c0_2 = arith.constant 0 : index
    %1 = vector.load %arg3[%c0_1, %c0_2] : memref<216x112xbf16, #tpu.memory_space<vmem>>, vector<216x112xbf16>
    %cst = arith.constant dense<0.000000e+00> : vector<8x112xf32>
    %2 = tpu.matmul %0, %1, %cst {dimension_numbers = #tpu.dot_dimension_numbers<[1], [0], [0], [1], [0, 0, 1, 1], [], []>} : vector<8x216xbf16>, vector<216x112xbf16>, vector<8x112xf32> -> vector<8x112xf32>
    %c0_3 = arith.constant 0 : index
    %c0_4 = arith.constant 0 : index
    %3 = vector.load %arg4[%c0_3, %c0_4] : memref<1x112xf32, #tpu.memory_space<vmem>>, vector<1x112xf32>
    %4 = vector.broadcast %3 : vector<1x112xf32> to vector<8x112xf32>
    %5 = arith.addf %2, %4 : vector<8x112xf32>
    %cst_5 = arith.constant 0.000000e+00 : f32
    %6 = vector.broadcast %cst_5 : f32 to vector<8x112xf32>
    %7 = arith.maximumf %5, %6 : vector<8x112xf32>
    %8 = arith.truncf %7 : vector<8x112xf32> to vector<8x112xbf16>
    %c0_6 = arith.constant 0 : index
    %c0_7 = arith.constant 0 : index
    %9 = vector.load %arg5[%c0_6, %c0_7] : memref<112x160xbf16, #tpu.memory_space<vmem>>, vector<112x160xbf16>
    %cst_8 = arith.constant dense<0.000000e+00> : vector<8x160xf32>
    %10 = tpu.matmul %8, %9, %cst_8 {dimension_numbers = #tpu.dot_dimension_numbers<[1], [0], [0], [1], [0, 0, 1, 1], [], []>} : vector<8x112xbf16>, vector<112x160xbf16>, vector<8x160xf32> -> vector<8x160xf32>
    %c0_9 = arith.constant 0 : index
    %c0_10 = arith.constant 0 : index
    %11 = vector.load %arg6[%c0_9, %c0_10] : memref<1x160xf32, #tpu.memory_space<vmem>>, vector<1x160xf32>
    %12 = vector.broadcast %11 : vector<1x160xf32> to vector<8x160xf32>
    %13 = arith.addf %10, %12 : vector<8x160xf32>
    %cst_11 = arith.constant 0.000000e+00 : f32
    %14 = vector.broadcast %cst_11 : f32 to vector<8x160xf32>
    %15 = arith.maximumf %13, %14 : vector<8x160xf32>
    %c0_12 = arith.constant 0 : index
    %c0_13 = arith.constant 0 : index
    %16 = vector.load %arg7[%c0_12, %c0_13] : memref<1x160xf32, #tpu.memory_space<vmem>>, vector<1x160xf32>
    %17 = vector.broadcast %16 : vector<1x160xf32> to vector<8x160xf32>
    %18 = arith.mulf %15, %17 : vector<8x160xf32>
    %cst_14 = arith.constant dense<0.000000e+00> : vector<8xf32>
    %19 = vector.multi_reduction <add>, %18, %cst_14 [1] : vector<8x160xf32> to vector<8xf32>
    %20 = vector.shape_cast %19 : vector<8xf32> to vector<8x1xf32>
    %21 = vector.shape_cast %20 : vector<8x1xf32> to vector<1x8xf32>
    %c0_15 = arith.constant 0 : index
    %c0_16 = arith.constant 0 : index
    %22 = vector.load %arg2[%c0_15, %c0_16] : memref<1x8xf32, #tpu.memory_space<vmem>>, vector<1x8xf32>
    %23 = arith.addf %21, %22 : vector<1x8xf32>
    %c0_17 = arith.constant 0 : index
    %c0_18 = arith.constant 0 : index
    %24 = vector.load %arg8[%c0_17, %c0_18] : memref<1x8xf32, #tpu.memory_space<vmem>>, vector<1x8xf32>
    tpu.vector_store %arg8[%c0_17, %c0_18], %23 {strides = array<i32>} : memref<1x8xf32, #tpu.memory_space<vmem>>, vector<1x8xf32>,
    return
  }
  func.func @transform_0(%arg0: i32) -> (i32, i32) {
    %c0_i32 = arith.constant 0 : i32
    %c0_i32_0 = arith.constant 0 : i32
    return %arg0, %c0_i32 : i32, i32
  }
  func.func @transform_1(%arg0: i32) -> (i32, i32) {
    %c0_i32 = arith.constant 0 : i32
    %c0_i32_0 = arith.constant 0 : i32
    return %c0_i32, %arg0 : i32, i32
  }
  func.func @transform_2(%arg0: i32) -> (i32, i32) {
    %c0_i32 = arith.constant 0 : i32
    %c0_i32_0 = arith.constant 0 : i32
    %c0_i32_1 = arith.constant 0 : i32
    return %c0_i32, %c0_i32_0 : i32, i32
  }
  func.func @transform_3(%arg0: i32) -> (i32, i32) {
    %c0_i32 = arith.constant 0 : i32
    %c0_i32_0 = arith.constant 0 : i32
    %c0_i32_1 = arith.constant 0 : i32
    return %c0_i32, %c0_i32_0 : i32, i32
  }
  func.func @transform_4(%arg0: i32) -> (i32, i32) {
    %c0_i32 = arith.constant 0 : i32
    %c0_i32_0 = arith.constant 0 : i32
    %c0_i32_1 = arith.constant 0 : i32
    return %c0_i32, %c0_i32_0 : i32, i32
  }
  func.func @transform_5(%arg0: i32) -> (i32, i32) {
    %c0_i32 = arith.constant 0 : i32
    %c0_i32_0 = arith.constant 0 : i32
    %c0_i32_1 = arith.constant 0 : i32
    return %c0_i32, %c0_i32_0 : i32, i32
  }
  func.func @transform_6(%arg0: i32) -> (i32, i32) {
    %c0_i32 = arith.constant 0 : i32
    %c0_i32_0 = arith.constant 0 : i32
    %c0_i32_1 = arith.constant 0 : i32
    return %c0_i32, %c0_i32_0 : i32, i32
  }
  func.func @transform_7(%arg0: i32) -> (i32, i32) {
    %c0_i32 = arith.constant 0 : i32
    %c0_i32_0 = arith.constant 0 : i32
    return %c0_i32, %arg0 : i32, i32
  }
}

</mosaic_0001>

<bundles_post_ra>
// kernel: tpu_custom_call.1
= control target key start
LH: loop header
LB: loop body
LE: loop exit
PB: predicated region body
PF: predicated region fallthrough
CT: control target
= control target key end

     0   :  { %v499_v1 = vmov 0   ;;  %vm150_vm0 = vcmask 719872   ;;  %s669_s0 = inlined_call_operand.vmem [shape: bf16[8,216], index: 0, kind: input, shape index: {}]   ;;  %s670_s1 = inlined_call_operand.vmem [shape: f32[1,8], index: 1, kind: input, shape index: {}]   ;;  %s671_s2 = inlined_call_operand.vmem [shape: bf16[216,112], index: 2, kind: input, shape index: {}]   ;;  %s672_s3 = inlined_call_operand.vmem [shape: f32[1,112], index: 3, kind: input, shape index: {}]   ;;  %s673_s4 = inlined_call_operand.vmem [shape: bf16[112,160], index: 4, kind: input, shape index: {}]   ;;  %s674_s5 = inlined_call_operand.vmem [shape: f32[1,160], index: 5, kind: input, shape index: {}]   ;;  %s675_s6 = inlined_call_operand.vmem [shape: f32[1,160], index: 6, kind: input, shape index: {}]   ;;  %s676_s7 = inlined_call_operand.hbm [shape: f32[1,8], index: 7, kind: output, shape index: {}]  }
   0x1   :  { %v438_v0 = vld [vmem:[%s671_s2] sm:$0xff]   ;;  %158 = vmatprep.subr.bf16.mxu0 %v499_v1  ;;  %332 = vmatprep.mubr.bf16.mxu1 %v499_v1  ;;  %v439_v2 = vld [vmem:[%s671_s2 + $0x8] sm:$0xff]   ;;  %v440_v3 = vld [vmem:[%s671_s2 + $0x10] sm:$0xff]  }
   0x2   :  { %159 = vmatpush1.bf16.msra.mxu0 %v438_v0  ;;  %436 = vset.pattern.permute.xlu1 %v499_v1  ;;  %v441_v4 = vld [vmem:[%s671_s2 + $0x18] sm:$0xff]   ;;  %v442_v5 = vld [vmem:[%s671_s2 + $0x20] sm:$0xff]   ;;  %v443_v11 = vld [vmem:[%s671_s2 + $0x28] sm:$0xff]  }
   0x3   :  { %160 = vmatprep.subr.bf16.mxu0 %v499_v1  ;;  %437 = vset.pattern.permute.xlu0 %v499_v1  ;;  %v28_v6 = vld [vmem:[%s669_s0] sm:$0xff]  ;;  %v457_v10 = vld [vmem:[%s673_s4 + $0x14] ss:$8 sps:$4 sm:$0xff]   ;;  %v459_v12 = vld [vmem:[%s673_s4 + $0x10] ss:$8 sps:$4 sm:$0xff]  }
   0x4   :  { %v402_v7 = vcombine.high %v28_v6, %v28_v6  ;;  %v454_v8 = vld [vmem:[%s673_s4 + $0x4] ss:$8 sps:$4 sm:$0xff]   ;;  %v456_v9 = vld [vmem:[%s673_s4] ss:$8 sps:$4 sm:$0xff]   ;;  %v444_v14 = vld [vmem:[%s671_s2 + $0x30] sm:$0xff]  }
   0x5   :  { %300 = vmatprep.subr.bf16.mxu1 %v454_v8  ;;  %v460_v13 = vld [vmem:[%s673_s4 + $0x24] ss:$8 sps:$4 sm:$0xff]   ;;  %v462_v15 = vld [vmem:[%s673_s4 + $0x20] ss:$8 sps:$4 sm:$0xff]   ;;  %v463_v16 = vld [vmem:[%s673_s4 + $0x34] ss:$8 sps:$4 sm:$0xff]  }
   0x6   :  { %161 = vmatpush1.bf16.msra.mxu0 %v439_v2  ;;  %417 = vmatprep.mubr.msk.bf16.mxu0 %vm150_vm0, %v402_v7 }
   0x7   :  { %162 = vmatprep.subr.bf16.mxu0 %v499_v1  ;;  %301 = vmatpush1.bf16.msra.mxu1 %v456_v9 }
   0x8   :  { %302 = vmatprep.subr.bf16.mxu1 %v457_v10 }
   0xa   :  { %163 = vmatpush1.bf16.msra.mxu0 %v440_v3 }
   0xb   :  { %164 = vmatprep.subr.bf16.mxu0 %v499_v1  ;;  %303 = vmatpush1.bf16.msra.mxu1 %v459_v12 }
   0xc   :  { %304 = vmatprep.subr.bf16.mxu1 %v460_v13 }
   0xe   :  { %165 = vmatpush1.bf16.msra.mxu0 %v441_v4 }
   0xf   :  { %166 = vmatprep.subr.bf16.mxu0 %v499_v1 }
  0x12   :  { %167 = vmatpush1.bf16.msra.mxu0 %v442_v5 }
  0x13   :  { %168 = vmatprep.subr.bf16.mxu0 %v499_v1 }
  0x16   :  { %169 = vmatpush1.bf16.msra.mxu0 %v443_v11 }
  0x17   :  { %12 = vsyncpa [#allocation3], 0  ;;  %170 = vmatprep.subr.bf16.mxu0 %v499_v1  ;;  %305 = vmatpush1.bf16.msra.mxu1 %v462_v15  ;;  %v465_v17 = vld [vmem:[%s673_s4 + $0x30] ss:$8 sps:$4 sm:$0xff]   ;;  %v466_v19 = vld [vmem:[%s673_s4 + $0x44] ss:$8 sps:$4 sm:$0xff]   ;;  %v401_v29 = vcombine.low %v28_v6, %v28_v6  ;;  %v216_v41 = vlaneseq }
  0x18   :  { %v445_v18 = vld [vmem:[%s671_s2 + $0x38] sm:$0xff]   ;;  %306 = vmatprep.subr.bf16.mxu1 %v463_v16  ;;  %v468_v20 = vld [vmem:[%s673_s4 + $0x40] ss:$8 sps:$4 sm:$0xff]   ;;  %v448_v24 = vld [vmem:[%s671_s2 + $0x50] sm:$0xff]   ;;  %vm154_vm1 = vcmask 1043456   ;;  %vm296_vm2 = vcmask 916480  }
  0x19   :  { %v446_v21 = vld [vmem:[%s671_s2 + $0x40] sm:$0xff]   ;;  %v469_v22 = vld [vmem:[%s673_s4 + $0x54] ss:$8 sps:$4 sm:$0xff]   ;;  %v447_v23 = vld [vmem:[%s671_s2 + $0x48] sm:$0xff]   ;;  %v217_v42 = vshrl.u32 %v216_v41, 7  ;;  %vm357_vm3 = vcmask 261120  }
  0x1a   :  { %171 = vmatpush1.bf16.msra.mxu0 %v444_v14  ;;  %v449_v25 = vld [vmem:[%s671_s2 + $0x58] sm:$0xff]   ;;  %v450_v26 = vld [vmem:[%s671_s2 + $0x60] sm:$0xff]   ;;  %v451_v27 = vld [vmem:[%s671_s2 + $0x68] ss:$0 sps:$4 sm:$0xff]   ;;  %v378_v3 = vand.u32 127, %v216_v41  ;;  %vm384_vm4 = vcmask 57344  }
  0x1b   :  { %172 = vmatprep.subr.bf16.mxu0 %v499_v1  ;;  %307 = vmatpush1.bf16.msra.mxu1 %v465_v17  ;;  %v156_v28 = vsel %vm154_vm1, %v451_v27, 0  ;;  %v471_v30 = vld [vmem:[%s673_s4 + $0x50] ss:$8 sps:$4 sm:$0xff]   ;;  %v472_v31 = vld [vmem:[%s673_s4 + $0x64] ss:$8 sps:$4 sm:$0xff]   ;;  %v218_v43 = vsub.s32 0, %v217_v42 }
  0x1c   :  { %308 = vmatprep.subr.bf16.mxu1 %v466_v19  ;;  %v474_v32 = vld [vmem:[%s673_s4 + $0x60] ss:$8 sps:$4 sm:$0xff]   ;;  %v222_v45 = vsub.s32 1, %v217_v42  ;;  %v381_v4 = vsub.s32 %v378_v3, %v217_v42 }
  0x1d   :  { %v400_v33 = vld [vmem:[%s672_s3] ss:$0 sm:$0xff] }
  0x1e   :  { %173 = vmatpush1.bf16.msra.mxu0 %v445_v18  ;;  %v214_v44 = vld [vmem:[%s674_s5] sm:$0x3] }
  0x1f   :  { %174 = vmatprep.subr.bf16.mxu0 %v499_v1  ;;  %309 = vmatpush1.bf16.msra.mxu1 %v468_v20  ;;  %v219_v46 = vrot.slane %v214_v44, %v218_v43  ;;  %v223_v47 = vrot.slane %v214_v44, %v222_v45  ;;  %v343_v48 = vld [vmem:[%s675_s6] sm:$0x3]  ;;  %s500_s6 = smov [#allocation2]  }
  0x20   :  { %310 = vmatprep.subr.bf16.mxu1 %v469_v22  ;;  %v352_v54 = vrot.slane %v343_v48, %v222_v45  ;;  %v348_v57 = vrot.slane %v343_v48, %v218_v43  ;;  %v433_v63 = vld [vmem:[%s670_s1] ss:$0 sm:$0xff]  ;;  %s392_s15 = sshll.u32 %s500_s6, 4  ;;  %s393_s15 = int_to_ptr.vmem [resolvable:$true] %s392_s15 }
  0x21   :  { %s475_s16 = scalar_lea.vmem %s393_s15, 16  ;;  %s479_s17 = scalar_lea.vmem %s393_s15, 32 }
  0x22   :  { %175 = vmatpush1.bf16.msra.mxu0 %v446_v21  ;;  %p476_p0 = scmp.ne.s32.totalorder %s393_s15, %s475_s16  ;;  %p480_p1 = scmp.lt.s32.totalorder %s393_s15, %s393_s15 }
  0x23   :  { %176 = vmatprep.subr.bf16.mxu0 %v499_v1  ;;  %311 = vmatpush1.bf16.msra.mxu1 %v471_v30  ;;  %p481_p2 = scmp.lt.s32.totalorder %s479_s17, %s475_s16 }
  0x24   :  { %312 = vmatprep.subr.bf16.mxu1 %v472_v31 }
  0x25   :  { %p482_p3 = por %p481_p2, %p480_p1 }
  0x26   :  { %177 = vmatpush1.bf16.msra.mxu0 %v447_v23 }
  0x27   :  { %178 = vmatprep.subr.bf16.mxu0 %v499_v1  ;;  %313 = vmatpush1.bf16.msra.mxu1 %v474_v32  ;;  %p483_p4 = pnand %p482_p3, %p476_p0 }
  0x2a   :  { %179 = vmatpush1.bf16.msra.mxu0 %v448_v24 }
  0x2b   :  { %180 = vmatprep.subr.bf16.mxu0 %v499_v1 }
  0x2e   :  { %181 = vmatpush1.bf16.msra.mxu0 %v449_v25 }
  0x2f   :  { %182 = vmatprep.subr.bf16.mxu0 %v499_v1 }
  0x32   :  { %183 = vmatpush1.bf16.msra.mxu0 %v450_v26 }
  0x33   :  { %184 = vmatprep.subr.bf16.mxu0 %v499_v1 }
  0x36   :  { %185 = vmatpush1.bf16.msra.mxu0 %v156_v28 }
  0x39   :  { %191 = vmatmul.mubr.bf16.vlgmr.msra.gmra.mrb[0].mxu0 %v401_v29 }
 0x10c   :  { %v192_v34 = vpop.f32.mrb[0].mxu0 }
 0x10d   :  { %v193_v35 = vadd.f32 %v400_v33, %v192_v34  ;;  %v194_v36 = vpop.f32.mrb[1].mxu0 }
 0x10e   :  { %v195_v37 = vpop.f32.mrb[2].mxu0 }
 0x10f   :  { %v198_v38 = vmax.f32 %v193_v35, 0.0  ;;  %v196_v39 = vpop.f32.mrb[3].mxu0 }
 0x111   :  { %v199_v40 = vpack.c.bf16 %v198_v38, %v198_v38 }
 0x113   :  { %432 = vmatmul.mubr.msk.bf16.vlgmr.msra.gmra.mrb[0].mxu1 %vm296_vm2, %v199_v40 }
 0x1e6   :  { %v334_v49 = vpop.f32.mrb[0].mxu1 }
 0x1e7   :  { %v335_v50 = vadd.f32 %v334_v49, %v219_v46  ;;  %v336_v51 = vpop.f32.mrb[1].mxu1 }
 0x1e8   :  { %v337_v52 = vadd.f32 %v336_v51, %v223_v47  ;;  %v338_v53 = vpop.f32.mrb[2].mxu1 }
 0x1e9   :  { %v341_v55 = vmax.f32 %v335_v50, 0.0  ;;  %v339_v56 = vpop.f32.mrb[3].mxu1 }
 0x1ea   :  { %v342_v58 = vmax.f32 %v337_v52, 0.0 }
 0x1eb   :  { %v355_v60 = vmul.f32 %v348_v57, %v341_v55 }
 0x1ec   :  { %v356_v59 = vmul.f32 %v352_v54, %v342_v58 }
 0x1ee   :  { %v358_v61 = vsel %vm357_vm3, %v356_v59, 0.0 }
 0x1ef   :  { %v359_v62 = vadd.f32 %v358_v61, %v355_v60 }
 0x1f1   :  { %360 = vadd.xlane.f32.xlu0 %v359_v62 }
 0x207   :  { %369 = vbcast.lane.b32.xlu0 %v433_v63, 256 }
 0x27e   :  { %v361_v0 = vpop.xlane.xlu0 %360 }
 0x282   :  { %v370_v1 = vpop.permute.xlu0 %369 }
 0x283   :  { %v372_v2 = vadd.f32 %v370_v1, %v361_v0 }
 0x285   :  { %375 = vperm.xlu1 %436, %v372_v2  }
 0x304   :  { %v376_v5 = vpop.permute.xlu1 %375 }
 0x305   :  { %v382_v6 = vrot.slane %v376_v5, %v381_v4 }
 0x307   :  { %385 = vst.msk [vmem:[#allocation2] sm:$0x1] %vm384_vm4, %v382_v6 }
 0x308   :  { %486 = shalt.err (!%p483_p4)
}
 0x309   :  { %s487_s0 = scalar_lea.hbm %s676_s7, 16 }
 0x30a   :  { %p488_p5 = scmp.ne.s32.totalorder %s676_s7, %s487_s0  ;;  %p491_p6 = scmp.lt.u32.totalorder %s487_s0, %s676_s7 }
 0x30c   :  { %p493_p7 = pnand %p491_p6, %p488_p5 }
 0x30e   :  { %496 = shalt.err (!%p493_p7)
}
 0x30f   :  { %395 = dma.vmem_to_hbm [thread:$0]  %s393_s15, 16, %s676_s7, [#allocation3]  }
 0x310   :  { %497 = dma.done.wait [#allocation3], 16  }
 0x311   :  { %498 = vsyncadd [#allocation3], 4294967280 }
 0x312   :  { %399 = vsyncpa [#allocation3], 1 }

</bundles_post_ra>
